<compile_context>
chip_gen: v5e
topology: v5e:2x2
jax: 0.10.0
libtpu: 0.0.40
codegen_flags: <defaults>
</compile_context>

<pallas_src>
import functools

import jax
import jax.numpy as jnp
import numpy as np
from jax.experimental import pallas as pl
from jax.experimental.pallas import tpu as pltpu

ETA = 0.2


# ---------------------------------------------------------------------------
# Helpers
# ---------------------------------------------------------------------------
def _round_up(a, m):
    return (a + m - 1) // m * m


def _vmem_capacity_bytes():
    # Per-generation physical VMEM (v5e/v6e: 128 MiB, v7x: 64 MiB per TensorCore).
    try:
        return int(pltpu.get_tpu_info().vmem_capacity_bytes)
    except Exception:
        return 64 << 20  # conservative fallback (v7x)


def _block_spec(shape, index_map, buffer_count=None):
    # Constant-index operands don't need double buffering; fall back gracefully if
    # pipeline_mode is unavailable in this JAX build.
    if buffer_count is None:
        return pl.BlockSpec(shape, index_map)
    try:
        return pl.BlockSpec(shape, index_map, pipeline_mode=pl.Buffered(buffer_count))
    except TypeError:
        return pl.BlockSpec(shape, index_map)


def _choose_k_tile(d, ec_pad, itemsize, weight_budget):
    """Pick the K (feature) tile for the fused weight slab."""
    full_bytes = d * ec_pad * itemsize
    if d % 128 != 0 or full_bytes <= weight_budget:
        # Whole slab fits (single, single-buffered K step), or D is not 128-aligned
        # so a full-dim block is the only legal choice.
        # TODO(synk): for huge non-128-aligned D, zero-pad D host-side so the
        # contraction can still be K-tiled.
        return d
    for cand in (2048, 1024, 512, 256, 128):
        if d % cand == 0 and 2 * cand * ec_pad * itemsize <= weight_budget:
            return cand
    return 128


# ---------------------------------------------------------------------------
# Stage 1: K-tiled fused expert matmul + L2 normalize + per-row evidential chain.
# ---------------------------------------------------------------------------
def _expert_matmul_w_kernel(x_ref, w_ref, b_ref, xi_ref, ew_ref, acc_ref, *,
                            num_experts, num_classes, class_pad, inv_eta):
    k = pl.program_id(1)

    @pl.when(k == 0)
    def _():
        acc_ref[...] = jnp.zeros_like(acc_ref)

    acc_ref[...] += jnp.dot(x_ref[...], w_ref[...],
                            preferred_element_type=jnp.float32)

    @pl.when(k == pl.num_programs(1) - 1)
    def _():
        C = num_classes
        Cp = class_pad
        z = acc_ref[...] + b_ref[...]                       # (TB, E*Cp) f32
        tb = z.shape[0]

        lane_mask = None
        if Cp != C:
            lane_mask = (jax.lax.broadcasted_iota(jnp.int32, (1, Cp), 1)
                         < C).astype(jnp.float32)

        w = jnp.ones((tb, 1), jnp.float32)
        prev_b = None
        for e in range(num_experts):                        # small compile-time E
            z_e = z[:, e * Cp:(e + 1) * Cp]
            # Pad lanes are exact zeros (zero weight/bias columns), so the L2 norm
            # over the padded block equals the unpadded one (torch F.normalize).
            ss = jnp.sum(z_e * z_e, axis=1, keepdims=True)
            xi_e = z_e * (1.0 / jnp.maximum(jnp.sqrt(ss), 1e-12))
            xi_ref[:, e * Cp:(e + 1) * Cp] = xi_e           # 128-aligned direct store

            # Evidential chain, per row; exp only on this expert's slice.
            e_alpha = jnp.exp(xi_e)                         # alpha - 1
            if lane_mask is not None:
                e_alpha = e_alpha * lane_mask               # drop pad lanes (exp(0)=1)
            S = jnp.sum(e_alpha, axis=1, keepdims=True) + float(C)
            b = e_alpha / S
            u = float(C) / S
            if prev_b is None:
                conf = jnp.zeros_like(S)
            else:
                conf = (jnp.sum(prev_b, axis=1, keepdims=True)
                        * jnp.sum(b, axis=1, keepdims=True)
                        - jnp.sum(prev_b * b, axis=1, keepdims=True))
            # Expert e is reweighted with w BEFORE the update (matches torch loop);
            # exp(w/eta) may overflow exactly like the reference does.
            ew_ref[:, e:e + 1] = jnp.exp(w * inv_eta)
            w = w * u / (1.0 - conf)
            prev_b = b


# ---------------------------------------------------------------------------
# Stage 2: batch-tiled weighted combine (re-reads xi exactly once).
# ---------------------------------------------------------------------------
def _combine_kernel(xi_ref, ew_ref, inv_sum_ref, out_ref, *, num_experts, class_pad):
    Cp = class_pad
    # Batch-normalized gating weights for this tile: (TB, E).
    scales = ew_ref[...] * inv_sum_ref[...]
    acc = xi_ref[:, 0:Cp] * scales[:, 0:1]
    for e in range(1, num_experts):
        acc = acc + xi_ref[:, e * Cp:(e + 1) * Cp] * scales[:, e:e + 1]
    out_ref[...] = acc


# ---------------------------------------------------------------------------
# Wrapper
# ---------------------------------------------------------------------------
def emgtlc_forward(x, Ws, biases, *, matmul_dtype=None, batch_tile=None):
    """x: (B, D) f32, Ws: (E, C, D) f32, biases: (E, C) f32 -> (B, C) f32.

    matmul_dtype: pass jnp.bfloat16 to run the fused expert matmul on the bf16 MXU
    path (f32 accumulate) -- recommended on all generations, including v5e (native
    bf16 MXU and halved weight-slab DMA).  Validate tolerance separately before
    enabling; the normalize / evidential chain always stays in f32.
    """
    B, D = x.shape
    E, C, _ = Ws.shape
    Cp = _round_up(C, 128)                 # lane-pad each expert's class block
    ECp = E * Cp

    mm_dtype = jnp.float32 if matmul_dtype is None else matmul_dtype
    mm_isz = jnp.dtype(mm_dtype).itemsize

    # ---- host-side layout prep (one-time): fused, lane-padded weight slab -------
    wt = jnp.transpose(Ws, (2, 0, 1))                        # (D, E, C)
    wt = jnp.pad(wt, ((0, 0), (0, 0), (0, Cp - C)))          # zero-pad class lanes
    w_fused = wt.reshape(D, ECp).astype(mm_dtype)
    bias_fused = jnp.pad(biases.astype(jnp.float32),
                         ((0, 0), (0, Cp - C))).reshape(1, ECp)
    x_mm = x.astype(mm_dtype)

    # ---- per-generation VMEM budget / tiling ------------------------------------
    vmem_cap = _vmem_capacity_bytes()
    budget = int(vmem_cap * 0.7)

    tk = _choose_k_tile(D, ECp, mm_isz, int(budget * 0.4))
    grid_k = D // tk

    def stage1_bytes(bt):
        w_bufs = 1 if grid_k == 1 else 2
        return (w_bufs * tk * ECp * mm_isz       # fused weight K-blocks
                + 2 * bt * tk * mm_isz           # x tiles (double buffered)
                + ECp * 4                        # bias (single buffered)
                + 2 * bt * ECp * 4               # xi output tiles
                + 2 * bt * E * 4                 # exp(w/eta) output tiles
                + bt * ECp * 4                   # f32 accumulator scratch
                + 2 * bt * ECp * 4)              # finalize temporaries (z, xi_e, exp)

    if batch_tile is None:
        batch_tile = 128
        for cand in (512, 256):                  # bigger LHS tiles feed the 256x256 MXU
            if stage1_bytes(cand) <= budget:
                batch_tile = cand
                break
    batch_tile = max(8, min(batch_tile, _round_up(B, 8)))
    assert batch_tile % 8 == 0, "batch_tile must be a multiple of 8 sublanes"

    B_pad = _round_up(B, batch_tile)             # pad batch instead of one giant tile
    grid_b = B_pad // batch_tile
    if B_pad > B:
        x_mm = jnp.pad(x_mm, ((0, B_pad - B), (0, 0)))

    vmem_limit_1 = max(16 << 20,
                       min(int(stage1_bytes(batch_tile) * 1.2) + (4 << 20),
                           int(vmem_cap * 0.9)))

    # ---- Stage 1 ------------------------------------------------------------------
    mm_kernel = functools.partial(_expert_matmul_w_kernel,
                                  num_experts=E, num_classes=C, class_pad=Cp,
                                  inv_eta=1.0 / ETA)
    w_bufcount = 1 if grid_k == 1 else None      # single-buffer when index is constant
    xi_all, ew_all = pl.pallas_call(
        mm_kernel,
        out_shape=(jax.ShapeDtypeStruct((B_pad, ECp), jnp.float32),
                   jax.ShapeDtypeStruct((B_pad, E), jnp.float32)),
        grid_spec=pltpu.PrefetchScalarGridSpec(
            num_scalar_prefetch=0,
            grid=(grid_b, grid_k),
            in_specs=[
                pl.BlockSpec((batch_tile, tk), lambda i, k: (i, k)),       # x
                _block_spec((tk, ECp), lambda i, k: (k, 0), w_bufcount),   # fused W
                _block_spec((1, ECp), lambda i, k: (0, 0), 1),             # fused bias
            ],
            out_specs=[
                pl.BlockSpec((batch_tile, ECp), lambda i, k: (i, 0)),      # xi
                pl.BlockSpec((batch_tile, E), lambda i, k: (i, 0)),        # exp(w/eta)
            ],
            scratch_shapes=[pltpu.VMEM((batch_tile, ECp), jnp.float32)],
        ),
        compiler_params=pltpu.CompilerParams(
            dimension_semantics=("parallel", "arbitrary"),
            vmem_limit_bytes=vmem_limit_1,
        ),
    )(x_mm, w_fused, bias_fused)

    # The only cross-row dependency: softmax-over-batch denominators of exp(w/eta)
    # (pad rows are excluded so batch padding cannot change the result).
    inv_ew_sum = 1.0 / jnp.sum(ew_all[:B], axis=0, keepdims=True)          # (1, E)

    # ---- Stage 2 ------------------------------------------------------------------
    stage2_bytes = (2 * batch_tile * ECp * 4 + 2 * batch_tile * E * 4 + E * 4
                    + 2 * batch_tile * Cp * 4 + 2 * batch_tile * Cp * 4)
    vmem_limit_2 = max(16 << 20,
                       min(int(stage2_bytes * 1.2) + (4 << 20), int(vmem_cap * 0.9)))

    comb_kernel = functools.partial(_combine_kernel, num_experts=E, class_pad=Cp)
    out_pad = pl.pallas_call(
        comb_kernel,
        out_shape=jax.ShapeDtypeStruct((B_pad, Cp), jnp.float32),
        grid_spec=pltpu.PrefetchScalarGridSpec(
            num_scalar_prefetch=0,
            grid=(grid_b,),
            in_specs=[
                pl.BlockSpec((batch_tile, ECp), lambda i: (i, 0)),
                pl.BlockSpec((batch_tile, E), lambda i: (i, 0)),
                _block_spec((1, E), lambda i: (0, 0), 1),
            ],
            out_specs=pl.BlockSpec((batch_tile, Cp), lambda i: (i, 0)),
        ),
        compiler_params=pltpu.CompilerParams(
            dimension_semantics=("parallel",),
            vmem_limit_bytes=vmem_limit_2,
        ),
    )(xi_all, ew_all, inv_ew_sum)

    return out_pad[:B, :C]


# ---------------------------------------------------------------------------
# Pure-JAX port of the PyTorch forward, for verification.
# ---------------------------------------------------------------------------
def emgtlc_reference(x, Ws, biases, eta=ETA):
    B = x.shape[0]
    E, C, _ = Ws.shape
    outs = []
    w = [jnp.ones((B,), jnp.float32)]
    b0 = None
    for i in range(E):
        z = x @ Ws[i].T + biases[i]
        xi = z / jnp.maximum(jnp.linalg.norm(z, axis=1, keepdims=True), 1e-12)
        outs.append(xi)
        alpha = jnp.exp(xi) + 1.0
        S = alpha.sum(axis=1, keepdims=True)
        b = (alpha - 1.0) / S
        u = C / S[:, 0]
        if b0 is None:
            Cc = 0.0
        else:
            Cc = b0.sum(1) * b.sum(1) - (b0 * b).sum(1)
        b0 = b
        w.append(w[-1] * u / (1.0 - Cc))
    exp_w = [jnp.exp(wi / eta) for wi in w]
    exp_w = [wi / wi.sum() for wi in exp_w]
    return sum(outs[i] * exp_w[i][:, None] for i in range(E))


if __name__ == "__main__":
    key = jax.random.PRNGKey(0)
    B, D, C, E = 8, 32, 16, 3   # batch, features, classes, num_experts

    k_x, k_w, k_b = jax.random.split(key, 3)
    x = jax.random.normal(k_x, (B, D), dtype=jnp.float32)
    # deterministic synthetic expert parameters (Linear(D -> C) per expert)
    Ws = jax.random.normal(k_w, (E, C, D), dtype=jnp.float32) * (1.0 / np.sqrt(D))
    biases = jax.random.normal(k_b, (E, C), dtype=jnp.float32) * 0.01

    out = jax.block_until_ready(emgtlc_forward(x, Ws, biases))
    ref = jax.block_until_ready(emgtlc_reference(x, Ws, biases))
    np.testing.assert_allclose(np.asarray(out), np.asarray(ref), rtol=2e-4, atol=5e-5)

    print("KERNEL_OK")
</pallas_src>

<mosaic_0001>
module attributes {stable_mosaic.version = 11 : i64} {
  func.func @_expert_matmul_w_kernel(%arg0: i32, %arg1: i32, %arg2: memref<8x32xf32, #tpu.memory_space<vmem>>, %arg3: memref<32x384xf32, #tpu.memory_space<vmem>>, %arg4: memref<1x384xf32, #tpu.memory_space<vmem>>, %arg5: memref<8x384xf32, #tpu.memory_space<vmem>>, %arg6: memref<8x3xf32, #tpu.memory_space<vmem>>, %arg7: memref<8x384xf32, #tpu.memory_space<vmem>>) attributes {dimension_semantics = [#tpu.dimension_semantics<parallel>, #tpu.dimension_semantics<arbitrary>], iteration_bounds = array<i64: 1, 1>, scalar_prefetch = 0 : i64, scratch_operands = 1 : i64, tpu.core_type = #tpu.core_type<tc>, window_params = [{transform_indices = @transform_0, window_bounds = array<i64: 8, 32>}, {pipeline_mode = #tpu.pipeline_mode<synchronous>, transform_indices = @transform_1, window_bounds = array<i64: 32, 384>}, {pipeline_mode = #tpu.pipeline_mode<synchronous>, transform_indices = @transform_2, window_bounds = array<i64: 1, 384>}, {transform_indices = @transform_3, window_bounds = array<i64: 8, 384>}, {transform_indices = @transform_4, window_bounds = array<i64: 8, 3>}]} {
    %c0_i32 = arith.constant 0 : i32
    %0 = arith.cmpi eq, %arg1, %c0_i32 : i32
    %1 = arith.extui %0 : i1 to i32
    %c0_i32_0 = arith.constant 0 : i32
    %2 = arith.cmpi ne, %1, %c0_i32_0 : i32
    scf.if %2 {
      %cst_10 = arith.constant 0.000000e+00 : f32
      %12 = vector.broadcast %cst_10 : f32 to vector<8x384xf32>
      %c0_11 = arith.constant 0 : index
      %c0_12 = arith.constant 0 : index
      %13 = vector.load %arg7[%c0_11, %c0_12] : memref<8x384xf32, #tpu.memory_space<vmem>>, vector<8x384xf32>
      tpu.vector_store %arg7[%c0_11, %c0_12], %12 {strides = array<i32>} : memref<8x384xf32, #tpu.memory_space<vmem>>, vector<8x384xf32>,
    } else {
    }
    %c0 = arith.constant 0 : index
    %c0_1 = arith.constant 0 : index
    %3 = vector.load %arg7[%c0, %c0_1] : memref<8x384xf32, #tpu.memory_space<vmem>>, vector<8x384xf32>
    %c0_2 = arith.constant 0 : index
    %c0_3 = arith.constant 0 : index
    %4 = vector.load %arg2[%c0_2, %c0_3] : memref<8x32xf32, #tpu.memory_space<vmem>>, vector<8x32xf32>
    %c0_4 = arith.constant 0 : index
    %c0_5 = arith.constant 0 : index
    %5 = vector.load %arg3[%c0_4, %c0_5] : memref<32x384xf32, #tpu.memory_space<vmem>>, vector<32x384xf32>
    %cst = arith.constant dense<0.000000e+00> : vector<8x384xf32>
    %6 = tpu.matmul %4, %5, %cst {dimension_numbers = #tpu.dot_dimension_numbers<[1], [0], [0], [1], [0, 0, 1, 1], [], []>} : vector<8x32xf32>, vector<32x384xf32>, vector<8x384xf32> -> vector<8x384xf32>
    %7 = arith.addf %3, %6 : vector<8x384xf32>
    %c0_6 = arith.constant 0 : index
    %c0_7 = arith.constant 0 : index
    %8 = vector.load %arg7[%c0_6, %c0_7] : memref<8x384xf32, #tpu.memory_space<vmem>>, vector<8x384xf32>
    tpu.vector_store %arg7[%c0_6, %c0_7], %7 {strides = array<i32>} : memref<8x384xf32, #tpu.memory_space<vmem>>, vector<8x384xf32>,
    %c0_i32_8 = arith.constant 0 : i32
    %9 = arith.cmpi eq, %arg1, %c0_i32_8 : i32
    %10 = arith.extui %9 : i1 to i32
    %c0_i32_9 = arith.constant 0 : i32
    %11 = arith.cmpi ne, %10, %c0_i32_9 : i32
    scf.if %11 {
      %c0_10 = arith.constant 0 : index
      %c0_11 = arith.constant 0 : index
      %12 = vector.load %arg7[%c0_10, %c0_11] : memref<8x384xf32, #tpu.memory_space<vmem>>, vector<8x384xf32>
      %c0_12 = arith.constant 0 : index
      %c0_13 = arith.constant 0 : index
      %13 = vector.load %arg4[%c0_12, %c0_13] : memref<1x384xf32, #tpu.memory_space<vmem>>, vector<1x384xf32>
      %14 = vector.broadcast %13 : vector<1x384xf32> to vector<8x384xf32>
      %15 = arith.addf %12, %14 : vector<8x384xf32>
      %16 = tpu.iota {dimensions = array<i32: 1>} : vector<1x128xi32>
      %c16_i32 = arith.constant 16 : i32
      %17 = vector.broadcast %c16_i32 : i32 to vector<1x128xi32>
      %18 = arith.cmpi slt, %16, %17 : vector<1x128xi32>
      %19 = arith.extui %18 : vector<1x128xi1> to vector<1x128xi32>
      %20 = arith.sitofp %19 : vector<1x128xi32> to vector<1x128xf32>
      %cst_14 = arith.constant 1.000000e+00 : f32
      %21 = vector.broadcast %cst_14 : f32 to vector<8x1xf32>
      %22 = vector.extract_strided_slice %15 {offsets = [0, 0], sizes = [8, 128], strides = [1, 1]} : vector<8x384xf32> to vector<8x128xf32>
      %23 = arith.mulf %22, %22 : vector<8x128xf32>
      %cst_15 = arith.constant dense<0.000000e+00> : vector<8xf32>
      %24 = vector.multi_reduction <add>, %23, %cst_15 [1] : vector<8x128xf32> to vector<8xf32>
      %25 = vector.shape_cast %24 : vector<8xf32> to vector<8x1xf32>
      %26 = math.sqrt %25 : vector<8x1xf32>
      %cst_16 = arith.constant 9.99999996E-13 : f32
      %27 = vector.broadcast %cst_16 : f32 to vector<8x1xf32>
      %28 = arith.maximumf %26, %27 : vector<8x1xf32>
      %cst_17 = arith.constant 1.000000e+00 : f32
      %29 = vector.broadcast %cst_17 : f32 to vector<8x1xf32>
      %30 = arith.divf %29, %28 : vector<8x1xf32>
      %31 = vector.broadcast %30 : vector<8x1xf32> to vector<8x128xf32>
      %32 = arith.mulf %22, %31 : vector<8x128xf32>
      %c0_18 = arith.constant 0 : index
      %c0_19 = arith.constant 0 : index
      %33 = vector.load %arg5[%c0_18, %c0_19] : memref<8x384xf32, #tpu.memory_space<vmem>>, vector<8x128xf32>
      tpu.vector_store %arg5[%c0_18, %c0_19], %32 {strides = array<i32>} : memref<8x384xf32, #tpu.memory_space<vmem>>, vector<8x128xf32>,
      %34 = math.exp %32 : vector<8x128xf32>
      %35 = vector.broadcast %20 : vector<1x128xf32> to vector<8x128xf32>
      %36 = arith.mulf %34, %35 : vector<8x128xf32>
      %cst_20 = arith.constant dense<0.000000e+00> : vector<8xf32>
      %37 = vector.multi_reduction <add>, %36, %cst_20 [1] : vector<8x128xf32> to vector<8xf32>
      %38 = vector.shape_cast %37 : vector<8xf32> to vector<8x1xf32>
      %cst_21 = arith.constant 1.600000e+01 : f32
      %39 = vector.broadcast %cst_21 : f32 to vector<8x1xf32>
      %40 = arith.addf %38, %39 : vector<8x1xf32>
      %41 = vector.broadcast %40 : vector<8x1xf32> to vector<8x128xf32>
      %42 = arith.divf %36, %41 : vector<8x128xf32>
      %cst_22 = arith.constant 1.600000e+01 : f32
      %43 = vector.broadcast %cst_22 : f32 to vector<8x1xf32>
      %44 = arith.divf %43, %40 : vector<8x1xf32>
      %cst_23 = arith.constant 0.000000e+00 : f32
      %45 = vector.broadcast %cst_23 : f32 to vector<8x1xf32>
      %cst_24 = arith.constant 5.000000e+00 : f32
      %46 = vector.broadcast %cst_24 : f32 to vector<8x1xf32>
      %47 = arith.mulf %21, %46 : vector<8x1xf32>
      %48 = math.exp %47 : vector<8x1xf32>
      %c0_25 = arith.constant 0 : index
      %c0_26 = arith.constant 0 : index
      %49 = vector.load %arg6[%c0_25, %c0_26] : memref<8x3xf32, #tpu.memory_space<vmem>>, vector<8x1xf32>
      tpu.vector_store %arg6[%c0_25, %c0_26], %48 {strides = array<i32>} : memref<8x3xf32, #tpu.memory_space<vmem>>, vector<8x1xf32>,
      %50 = arith.mulf %21, %44 : vector<8x1xf32>
      %cst_27 = arith.constant 1.000000e+00 : f32
      %51 = vector.broadcast %cst_27 : f32 to vector<8x1xf32>
      %52 = arith.subf %51, %45 : vector<8x1xf32>
      %53 = arith.divf %50, %52 : vector<8x1xf32>
      %54 = vector.extract_strided_slice %15 {offsets = [0, 128], sizes = [8, 128], strides = [1, 1]} : vector<8x384xf32> to vector<8x128xf32>
      %55 = arith.mulf %54, %54 : vector<8x128xf32>
      %cst_28 = arith.constant dense<0.000000e+00> : vector<8xf32>
      %56 = vector.multi_reduction <add>, %55, %cst_28 [1] : vector<8x128xf32> to vector<8xf32>
      %57 = vector.shape_cast %56 : vector<8xf32> to vector<8x1xf32>
      %58 = math.sqrt %57 : vector<8x1xf32>
      %cst_29 = arith.constant 9.99999996E-13 : f32
      %59 = vector.broadcast %cst_29 : f32 to vector<8x1xf32>
      %60 = arith.maximumf %58, %59 : vector<8x1xf32>
      %cst_30 = arith.constant 1.000000e+00 : f32
      %61 = vector.broadcast %cst_30 : f32 to vector<8x1xf32>
      %62 = arith.divf %61, %60 : vector<8x1xf32>
      %63 = vector.broadcast %62 : vector<8x1xf32> to vector<8x128xf32>
      %64 = arith.mulf %54, %63 : vector<8x128xf32>
      %c0_31 = arith.constant 0 : index
      %c128 = arith.constant 128 : index
      %65 = vector.load %arg5[%c0_31, %c128] : memref<8x384xf32, #tpu.memory_space<vmem>>, vector<8x128xf32>
      tpu.vector_store %arg5[%c0_31, %c128], %64 {strides = array<i32>} : memref<8x384xf32, #tpu.memory_space<vmem>>, vector<8x128xf32>,
      %66 = math.exp %64 : vector<8x128xf32>
      %67 = vector.broadcast %20 : vector<1x128xf32> to vector<8x128xf32>
      %68 = arith.mulf %66, %67 : vector<8x128xf32>
      %cst_32 = arith.constant dense<0.000000e+00> : vector<8xf32>
      %69 = vector.multi_reduction <add>, %68, %cst_32 [1] : vector<8x128xf32> to vector<8xf32>
      %70 = vector.shape_cast %69 : vector<8xf32> to vector<8x1xf32>
      %cst_33 = arith.constant 1.600000e+01 : f32
      %71 = vector.broadcast %cst_33 : f32 to vector<8x1xf32>
      %72 = arith.addf %70, %71 : vector<8x1xf32>
      %73 = vector.broadcast %72 : vector<8x1xf32> to vector<8x128xf32>
      %74 = arith.divf %68, %73 : vector<8x128xf32>
      %cst_34 = arith.constant 1.600000e+01 : f32
      %75 = vector.broadcast %cst_34 : f32 to vector<8x1xf32>
      %76 = arith.divf %75, %72 : vector<8x1xf32>
      %cst_35 = arith.constant dense<0.000000e+00> : vector<8xf32>
      %77 = vector.multi_reduction <add>, %42, %cst_35 [1] : vector<8x128xf32> to vector<8xf32>
      %78 = vector.shape_cast %77 : vector<8xf32> to vector<8x1xf32>
      %cst_36 = arith.constant dense<0.000000e+00> : vector<8xf32>
      %79 = vector.multi_reduction <add>, %74, %cst_36 [1] : vector<8x128xf32> to vector<8xf32>
      %80 = vector.shape_cast %79 : vector<8xf32> to vector<8x1xf32>
      %81 = arith.mulf %78, %80 : vector<8x1xf32>
      %82 = arith.mulf %42, %74 : vector<8x128xf32>
      %cst_37 = arith.constant dense<0.000000e+00> : vector<8xf32>
      %83 = vector.multi_reduction <add>, %82, %cst_37 [1] : vector<8x128xf32> to vector<8xf32>
      %84 = vector.shape_cast %83 : vector<8xf32> to vector<8x1xf32>
      %85 = arith.subf %81, %84 : vector<8x1xf32>
      %cst_38 = arith.constant 5.000000e+00 : f32
      %86 = vector.broadcast %cst_38 : f32 to vector<8x1xf32>
      %87 = arith.mulf %53, %86 : vector<8x1xf32>
      %88 = math.exp %87 : vector<8x1xf32>
      %c0_39 = arith.constant 0 : index
      %c1 = arith.constant 1 : index
      %89 = vector.load %arg6[%c0_39, %c1] : memref<8x3xf32, #tpu.memory_space<vmem>>, vector<8x1xf32>
      tpu.vector_store %arg6[%c0_39, %c1], %88 {strides = array<i32>} : memref<8x3xf32, #tpu.memory_space<vmem>>, vector<8x1xf32>,
      %90 = arith.mulf %53, %76 : vector<8x1xf32>
      %cst_40 = arith.constant 1.000000e+00 : f32
      %91 = vector.broadcast %cst_40 : f32 to vector<8x1xf32>
      %92 = arith.subf %91, %85 : vector<8x1xf32>
      %93 = arith.divf %90, %92 : vector<8x1xf32>
      %94 = vector.extract_strided_slice %15 {offsets = [0, 256], sizes = [8, 128], strides = [1, 1]} : vector<8x384xf32> to vector<8x128xf32>
      %95 = arith.mulf %94, %94 : vector<8x128xf32>
      %cst_41 = arith.constant dense<0.000000e+00> : vector<8xf32>
      %96 = vector.multi_reduction <add>, %95, %cst_41 [1] : vector<8x128xf32> to vector<8xf32>
      %97 = vector.shape_cast %96 : vector<8xf32> to vector<8x1xf32>
      %98 = math.sqrt %97 : vector<8x1xf32>
      %cst_42 = arith.constant 9.99999996E-13 : f32
      %99 = vector.broadcast %cst_42 : f32 to vector<8x1xf32>
      %100 = arith.maximumf %98, %99 : vector<8x1xf32>
      %cst_43 = arith.constant 1.000000e+00 : f32
      %101 = vector.broadcast %cst_43 : f32 to vector<8x1xf32>
      %102 = arith.divf %101, %100 : vector<8x1xf32>
      %103 = vector.broadcast %102 : vector<8x1xf32> to vector<8x128xf32>
      %104 = arith.mulf %94, %103 : vector<8x128xf32>
      %c0_44 = arith.constant 0 : index
      %c256 = arith.constant 256 : index
      %105 = vector.load %arg5[%c0_44, %c256] : memref<8x384xf32, #tpu.memory_space<vmem>>, vector<8x128xf32>
      tpu.vector_store %arg5[%c0_44, %c256], %104 {strides = array<i32>} : memref<8x384xf32, #tpu.memory_space<vmem>>, vector<8x128xf32>,
      %cst_45 = arith.constant 5.000000e+00 : f32
      %106 = vector.broadcast %cst_45 : f32 to vector<8x1xf32>
      %107 = arith.mulf %93, %106 : vector<8x1xf32>
      %108 = math.exp %107 : vector<8x1xf32>
      %c0_46 = arith.constant 0 : index
      %c2 = arith.constant 2 : index
      %109 = vector.load %arg6[%c0_46, %c2] : memref<8x3xf32, #tpu.memory_space<vmem>>, vector<8x1xf32>
      tpu.vector_store %arg6[%c0_46, %c2], %108 {strides = array<i32>} : memref<8x3xf32, #tpu.memory_space<vmem>>, vector<8x1xf32>,
    } else {
    }
    return
  }
  func.func @transform_0(%arg0: i32, %arg1: i32) -> (i32, i32) {
    %c0_i32 = arith.constant 0 : i32
    return %arg0, %arg1 : i32, i32
  }
  func.func @transform_1(%arg0: i32, %arg1: i32) -> (i32, i32) {
    %c0_i32 = arith.constant 0 : i32
    %c0_i32_0 = arith.constant 0 : i32
    return %arg1, %c0_i32 : i32, i32
  }
  func.func @transform_2(%arg0: i32, %arg1: i32) -> (i32, i32) {
    %c0_i32 = arith.constant 0 : i32
    %c0_i32_0 = arith.constant 0 : i32
    %c0_i32_1 = arith.constant 0 : i32
    return %c0_i32, %c0_i32_0 : i32, i32
  }
  func.func @transform_3(%arg0: i32, %arg1: i32) -> (i32, i32) {
    %c0_i32 = arith.constant 0 : i32
    %c0_i32_0 = arith.constant 0 : i32
    return %arg0, %c0_i32 : i32, i32
  }
  func.func @transform_4(%arg0: i32, %arg1: i32) -> (i32, i32) {
    %c0_i32 = arith.constant 0 : i32
    %c0_i32_0 = arith.constant 0 : i32
    return %arg0, %c0_i32 : i32, i32
  }
}

</mosaic_0001>

<bundles_post_ra>
// kernel: tpu_custom_call.1
= control target key start
LH: loop header
LB: loop body
LE: loop exit
PB: predicated region body
PF: predicated region fallthrough
CT: control target
= control target key end

     0   :  { %10 = vsyncpa [#allocation4], 0  ;;  %s595_s0 = inlined_call_operand.hbm [shape: f32[8,32], index: 0, kind: input, shape index: {}]   ;;  %s596_s1 = inlined_call_operand.hbm [shape: f32[32,384], index: 1, kind: input, shape index: {}]   ;;  %s597_s2 = inlined_call_operand.hbm [shape: f32[1,384], index: 2, kind: input, shape index: {}]   ;;  %s598_s3 = inlined_call_operand.hbm [shape: f32[8,384], index: 3, kind: output, shape index: {0}]   ;;  %s599_s4 = inlined_call_operand.vmem [shape: f32[8,3], index: 4, kind: output, shape index: {1}]  }
   0x1   :  { %11 = vsyncpa [#allocation7], 0  ;;  %s28_s17 = sshll.u32 %s596_s1, 4  ;;  %s29_s17 = int_to_ptr.hbm [resolvable:$true] %s28_s17 }
   0x2   :  { %12 = vsyncpa [#allocation5], 0  ;;  %s518_s18 = smov [#allocation6]   ;;  %s18_s22 = sshll.u32 %s595_s0, 4  ;;  %s19_s22 = int_to_ptr.hbm [resolvable:$true] %s18_s22 }
   0x3   :  { %s30_s19 = sshll.u32 %s518_s18, 4  ;;  %s519_s23 = smov 384   ;;  %s31_s19 = int_to_ptr.vmem [resolvable:$true] %s30_s19 }
   0x4   :  { %s520_s24 = smov 24   ;;  %s521_s25 = smov [#allocation3]  }
   0x5   :  { %36 = dma.hbm_to_vmem [thread:$0]  %s29_s17, 1536, %s31_s19, [#allocation7], %s519_s23, %s519_s23, %s520_s24  }
   0x6   :  { %s20_s26 = sshll.u32 %s521_s25, 4  ;;  %s42_s29 = sshll.u32 %s597_s2, 4  ;;  %s21_s26 = int_to_ptr.vmem [resolvable:$true] %s20_s26  ;;  %s43_s29 = int_to_ptr.hbm [resolvable:$true] %s42_s29 }
   0x7   :  { %23 = dma.hbm_to_vmem [thread:$0]  %s19_s22, 128, %s21_s26, [#allocation4]  }
   0x8   :  { %s522_s1 = smov [#allocation8]  }
   0x9   :  { %s44_s30 = sshll.u32 %s522_s1, 4  ;;  %s45_s30 = int_to_ptr.vmem [resolvable:$true] %s44_s30 }
   0xa   :  { %47 = dma.hbm_to_vmem [thread:$0]  %s43_s29, 48, %s45_s30, [#allocation7]  }
   0xb   :  { %512 = dma.done.wait [#allocation4], 128  }
   0xc   :  { %513 = vsyncadd [#allocation4], 4294967168 }
   0xd   :  { %514 = dma.done.wait [#allocation7], 1584  }
   0xe   :  { %515 = vsyncadd [#allocation7], 4294965712  ;;  %v80_v0 = vld [vmem:[#allocation6 + $0x48] sm:$0xff]  ;;  %v77_v1 = vld [vmem:[#allocation6 + $0x30] sm:$0xff]  ;;  %vm83_vm0 = vcmask 261120   ;;  %v170_v58 = vlaneseq  ;;  %s525_s7 = smov [#allocation9]  }
   0xf   :  { %99 = vmatpush.msra.mxu0 %v80_v0  ;;  %v81_v2 = vld [vmem:[#allocation6 + $0x50] sm:$0xff]  ;;  %v74_v3 = vld [vmem:[#allocation6 + $0x18] sm:$0xff]  ;;  %v75_v5 = vld [vmem:[#allocation6 + $0x20] sm:$0xff]  ;;  %s361_s8 = sshll.u32 %s525_s7, 4  ;;  %s363_s11 = sshll.u32 %s598_s3, 4  ;;  %s362_s8 = int_to_ptr.vmem [resolvable:$true] %s361_s8  ;;  %s364_s11 = int_to_ptr.hbm [resolvable:$true] %s363_s11 }
  0x10   :  { %119 = vmatpush.msra.mxu1 %v81_v2  ;;  %v78_v4 = vld [vmem:[#allocation6 + $0x38] sm:$0xff]  ;;  %v71_v6 = vld [vmem:[#allocation6] sm:$0xff]  ;;  %v72_v8 = vld [vmem:[#allocation6 + $0x8] sm:$0xff] }
  0x11   :  { %100 = vmatpush.msra.mxu0 %v77_v1  ;;  %v70_v7 = vld [vmem:[#allocation3] sm:$0xff]  ;;  %v79_v10 = vld [vmem:[#allocation6 + $0x40] sm:$0xff]  ;;  %v76_v11 = vld [vmem:[#allocation6 + $0x28] sm:$0xff]  ;;  %v171_v1 = vand.u32 127, %v170_v58 }
  0x12   :  { %120 = vmatpush.msra.mxu1 %v78_v4  ;;  %v82_v9 = vld [vmem:[#allocation6 + $0x58] sm:$0xff]  ;;  %v73_v12 = vld [vmem:[#allocation6 + $0x10] sm:$0xff]  ;;  %v159_v13 = vld [vmem:[#allocation8] sm:$0x7] }
  0x13   :  { %101 = vmatpush.msra.mxu0 %v74_v3  ;;  %139 = vmatpush.msra.mxu2 %v82_v9  ;;  %v161_v14 = vperm.slane %v159_v13, 0  ;;  %v162_v17 = vperm.slane %v159_v13, 1  ;;  %v163_v22 = vperm.slane %v159_v13, 2  ;;  %vm172_vm11 = vcmp.lt.s32.totalorder %v171_v1, 16 }
  0x14   :  { %121 = vmatpush.msra.mxu1 %v75_v5 }
  0x15   :  { %102 = vmatpush.msra.mxu0 %v71_v6  ;;  %140 = vmatpush.msra.mxu2 %v79_v10  ;;  %v523_v10 = vmov 0.0  }
  0x16   :  { %378 = vmatmul.msk.f32.vlgmr.msra.gmra.mxu0 %vm83_vm0, %v70_v7  ;;  %122 = vmatpush.msra.mxu1 %v72_v8 }
  0x17   :  { %379 = vmatmul.msk.f32.vlgmr.msra.gmra.mxu1 %vm83_vm0, %v70_v7  ;;  %141 = vmatpush.msra.mxu2 %v76_v11  ;;  %v381_v11 = vsel %vm172_vm11, 1.0, %v523_v10 }
  0x19   :  { %142 = vmatpush.msra.mxu2 %v73_v12 }
  0x1a   :  { %380 = vmatmul.msk.f32.vlgmr.msra.gmra.mxu2 %vm83_vm0, %v70_v7 }
  0x93   :  { %v104_v15 = vpop.f32.mrf.mxu0 }
  0x94   :  { %v560_v16 = vadd.f32 %v161_v14, %v104_v15  ;;  %v124_v18 = vpop.f32.mrf.mxu1 }
  0x95   :  { %v564_v20 = vadd.f32 %v162_v17, %v124_v18 }
  0x96   :  { %v175_v19 = vmul.f32 %v560_v16, %v560_v16 }
  0x97   :  { %v232_v21 = vmul.f32 %v564_v20, %v564_v20 }
  0x98   :  { %176 = vadd.xlane.f32.xlu0 %v175_v19 }
  0x9d   :  { %v144_v23 = vpop.f32.mrf.mxu2 }
  0x9e   :  { %v568_v24 = vadd.f32 %v163_v22, %v144_v23 }
  0xa0   :  { %233 = vadd.xlane.f32.xlu0 %v232_v21  ;;  %v318_v25 = vmul.f32 %v568_v24, %v568_v24 }
  0xa2   :  { %319 = vadd.xlane.f32.xlu2 %v318_v25 }
 0x10b   :  { %v177_v26 = vpop.xlane.xlu0 %176 }
 0x10c   :  { %390 = vrsqrt.f32 %v177_v26  ;;  %vm185_vm1 = vcmp.eq.f32.partialorder %v177_v26, inf  ;;  %v188_v38 = vand.u32 2147483648, %v177_v26  ;;  %vm187_vm2 = vcmp.eq.f32.partialorder %v177_v26, 0.0 }
 0x112   :  { %v391_v27 = vpop.eup %390 }
 0x113   :  { %v179_v28 = vmul.f32 %v391_v27, %v177_v26  ;;  %v234_v29 = vpop.xlane.xlu0 %233 }
 0x114   :  { %392 = vrsqrt.f32 %v234_v29  ;;  %vm242_vm3 = vcmp.eq.f32.partialorder %v234_v29, inf  ;;  %v245_v46 = vand.u32 2147483648, %v234_v29  ;;  %vm244_vm4 = vcmp.eq.f32.partialorder %v234_v29, 0.0 }
 0x115   :  { %v180_v30 = vmul.f32 %v391_v27, %v179_v28  ;;  %v320_v18 = vpop.xlane.xlu2 %319 }
 0x116   :  { %vm328_vm14 = vcmp.eq.f32.partialorder %v320_v18, inf  ;;  %vm330_vm15 = vcmp.eq.f32.partialorder %v320_v18, 0.0 }
 0x117   :  { %v181_v31 = vmul.f32 0.5, %v180_v30 }
 0x119   :  { %v182_v32 = vsub.f32 1.5, %v181_v31 }
 0x11a   :  { %v393_v33 = vpop.eup %392 }
 0x11b   :  { %v183_v34 = vmul.f32 %v391_v27, %v182_v32  ;;  %v236_v35 = vmul.f32 %v393_v33, %v234_v29 }
 0x11d   :  { %v184_v36 = vmul.f32 %v183_v34, %v177_v26  ;;  %v237_v37 = vmul.f32 %v393_v33, %v236_v35 }
 0x11f   :  { %v186_v39 = vsel %vm185_vm1, %v177_v26, %v184_v36  ;;  %v238_v40 = vmul.f32 0.5, %v237_v37  ;;  %v331_v26 = vand.u32 2147483648, %v320_v18 }
 0x120   :  { %v189_v41 = vsel %vm187_vm2, %v188_v38, %v186_v39 }
 0x121   :  { %v190_v42 = vmax.f32 %v189_v41, 1e-12  ;;  %v239_v43 = vsub.f32 1.5, %v238_v40  ;;  %v524_v41 = vmov 148.41316  }
 0x123   :  { %394 = vrcp.f32 %v190_v42  ;;  %v240_v44 = vmul.f32 %v393_v33, %v239_v43  ;;  %v202_v53 = vand.u32 2147483648, %v190_v42  ;;  %v200_v55 = vand.u32 2147483647, %v190_v42 }
 0x124   :  { %vm196_vm6 = vweird.f32 %v190_v42 }
 0x125   :  { %v241_v45 = vmul.f32 %v240_v44, %v234_v29  ;;  %v203_v59 = vor.u32 1.1754944e-38, %v202_v53  ;;  %vm201_vm8 = vcmp.eq.f32.partialorder %v200_v55, 8.507059e+37 }
 0x127   :  { %v243_v47 = vsel %vm242_vm3, %v234_v29, %v241_v45 }
 0x128   :  { %v246_v48 = vsel %vm244_vm4, %v245_v46, %v243_v47  ;;  %vm230_vm4 = vcmask 7168  }
 0x129   :  { %v395_v49 = vpop.eup %394  ;;  %v247_v50 = vmax.f32 %v246_v48, 1e-12  ;;  %231 = vst.msk [vmem:[%s599_s4] sm:$0xff] %vm230_vm4, %v524_v41 }
 0x12a   :  { %v192_v51 = vmul.f32 %v395_v49, %v190_v42  ;;  %vm197_vm5 = vweird.f32 %v395_v49 }
 0x12b   :  { %396 = vrcp.f32 %v247_v50  ;;  %vm198_vm7 = vmor %vm196_vm6, %vm197_vm5  ;;  %v259_v2 = vand.u32 2147483648, %v247_v50  ;;  %v257_v5 = vand.u32 2147483647, %v247_v50  ;;  %vm253_vm10 = vweird.f32 %v247_v50 }
 0x12c   :  { %v193_v52 = vsub.f32 1.0, %v192_v51 }
 0x12d   :  { %v260_v7 = vor.u32 1.1754944e-38, %v259_v2  ;;  %vm258_vm13 = vcmp.eq.f32.partialorder %v257_v5, 8.507059e+37 }
 0x12e   :  { %v194_v54 = vmul.f32 %v395_v49, %v193_v52 }
 0x130   :  { %v195_v56 = vadd.f32 %v395_v49, %v194_v54 }
 0x131   :  { %v397_v57 = vpop.eup %396 }
 0x132   :  { %v199_v60 = vsel %vm198_vm7, %v395_v49, %v195_v56  ;;  %v249_v61 = vmul.f32 %v397_v57, %v247_v50  ;;  %vm254_vm9 = vweird.f32 %v397_v57 }
 0x133   :  { %v204_v62 = vsel %vm201_vm8, %v203_v59, %v199_v60  ;;  %vm255_vm12 = vmor %vm253_vm10, %vm254_vm9 }
 0x134   :  { %v206_v63 = vmul.f32 %v204_v62, %v560_v16  ;;  %v250_v0 = vsub.f32 1.0, %v249_v61 }
 0x136   :  { %v208_v3 = vmul.f32 1.442695, %v206_v63  ;;  %207 = vst [vmem:[#allocation9] sm:$0xff] %v206_v63  ;;  %v251_v4 = vmul.f32 %v397_v57, %v250_v0 }
 0x138   :  { %398 = vpow2.f32 %v208_v3  ;;  %v252_v6 = vadd.f32 %v397_v57, %v251_v4 }
 0x13a   :  { %v256_v8 = vsel %vm255_vm12, %v397_v57, %v252_v6 }
 0x13b   :  { %v261_v9 = vsel %vm258_vm13, %v260_v7, %v256_v8  ;;  %vm299_vm13 = vcmask 15368  }
 0x13c   :  { %v263_v12 = vmul.f32 %v261_v9, %v564_v20 }
 0x13e   :  { %v399_v13 = vpop.eup %398  ;;  %v265_v14 = vmul.f32 1.442695, %v263_v12  ;;  %264 = vst [vmem:[#allocation9 + $0x8] sm:$0xff] %v263_v12 }
 0x13f   :  { %v574_v15 = vmul.f32 %v399_v13, %v381_v11 }
 0x140   :  { %400 = vpow2.f32 %v265_v14 }
 0x141   :  { %211 = vadd.xlane.f32.xlu1 %v574_v15  ;;  %402 = vrsqrt.f32 %v320_v18 }
 0x146   :  { %v401_v16 = vpop.eup %400 }
 0x147   :  { %v577_v17 = vmul.f32 %v401_v16, %v381_v11  ;;  %v403_v19 = vpop.eup %402 }
 0x148   :  { %v322_v21 = vmul.f32 %v403_v19, %v320_v18 }
 0x149   :  { %268 = vadd.xlane.f32.xlu1 %v577_v17 }
 0x14a   :  { %v323_v22 = vmul.f32 %v403_v19, %v322_v21 }
 0x14c   :  { %v324_v23 = vmul.f32 0.5, %v323_v22 }
 0x14e   :  { %v325_v20 = vsub.f32 1.5, %v324_v23 }
 0x150   :  { %v326_v25 = vmul.f32 %v403_v19, %v325_v20 }
 0x152   :  { %v327_v27 = vmul.f32 %v326_v25, %v320_v18 }
 0x154   :  { %v329_v28 = vsel %vm328_vm14, %v320_v18, %v327_v27 }
 0x155   :  { %v332_v29 = vsel %vm330_vm15, %v331_v26, %v329_v28 }
 0x156   :  { %v333_v30 = vmax.f32 %v332_v29, 1e-12 }
 0x158   :  { %404 = vrcp.f32 %v333_v30  ;;  %v345_v35 = vand.u32 2147483648, %v333_v30  ;;  %vm339_vm0 = vweird.f32 %v333_v30  ;;  %v343_v37 = vand.u32 2147483647, %v333_v30 }
 0x15a   :  { %v346_v38 = vor.u32 1.1754944e-38, %v345_v35  ;;  %vm344_vm3 = vcmp.eq.f32.partialorder %v343_v37, 8.507059e+37 }
 0x15e   :  { %v405_v31 = vpop.eup %404 }
 0x15f   :  { %v335_v32 = vmul.f32 %v405_v31, %v333_v30  ;;  %vm340_vm1 = vweird.f32 %v405_v31 }
 0x160   :  { %vm341_vm2 = vmor %vm339_vm0, %vm340_vm1 }
 0x161   :  { %v336_v33 = vsub.f32 1.0, %v335_v32 }
 0x163   :  { %v337_v34 = vmul.f32 %v405_v31, %v336_v33 }
 0x165   :  { %v338_v36 = vadd.f32 %v405_v31, %v337_v34 }
 0x167   :  { %v342_v39 = vsel %vm341_vm2, %v405_v31, %v338_v36  ;;  %vm354_vm2 = vcmask 23568  }
 0x168   :  { %v347_v40 = vsel %vm344_vm3, %v346_v38, %v342_v39 }
 0x169   :  { %v349_v42 = vmul.f32 %v347_v40, %v568_v24 }
 0x16b   :  { %350 = vst [vmem:[#allocation9 + $0x10] sm:$0xff] %v349_v42 }
 0x16c   :  { %366 = dma.vmem_to_hbm [thread:$0]  %s362_s8, 384, %s364_s11, [#allocation5]  }
 0x1b4   :  { %v212_v43 = vpop.xlane.xlu1 %211 }
 0x1b5   :  { %v213_v44 = vadd.f32 16.0, %v212_v43 }
 0x1b7   :  { %406 = vrcp.f32 %v213_v44  ;;  %v225_v50 = vand.u32 2147483648, %v213_v44  ;;  %v223_v52 = vand.u32 2147483647, %v213_v44  ;;  %vm219_vm6 = vweird.f32 %v213_v44 }
 0x1b9   :  { %v226_v55 = vor.u32 1.1754944e-38, %v225_v50  ;;  %vm224_vm8 = vcmp.eq.f32.partialorder %v223_v52, 8.507059e+37 }
 0x1bc   :  { %v269_v45 = vpop.xlane.xlu1 %268 }
 0x1bd   :  { %v407_v46 = vpop.eup %406  ;;  %v270_v47 = vadd.f32 16.0, %v269_v45 }
 0x1be   :  { %v215_v48 = vmul.f32 %v407_v46, %v213_v44  ;;  %vm220_vm5 = vweird.f32 %v407_v46 }
 0x1bf   :  { %408 = vrcp.f32 %v270_v47  ;;  %vm221_vm7 = vmor %vm219_vm6, %vm220_vm5  ;;  %v282_v61 = vand.u32 2147483648, %v270_v47  ;;  %v280_v0 = vand.u32 2147483647, %v270_v47  ;;  %vm276_vm10 = vweird.f32 %v270_v47 }
 0x1c0   :  { %v216_v49 = vsub.f32 1.0, %v215_v48 }
 0x1c1   :  { %v283_v3 = vor.u32 1.1754944e-38, %v282_v61  ;;  %vm281_vm12 = vcmp.eq.f32.partialorder %v280_v0, 8.507059e+37 }
 0x1c2   :  { %v217_v51 = vmul.f32 %v407_v46, %v216_v49 }
 0x1c4   :  { %v218_v53 = vadd.f32 %v407_v46, %v217_v51 }
 0x1c5   :  { %v409_v54 = vpop.eup %408 }
 0x1c6   :  { %v272_v24 = vmul.f32 %v409_v54, %v270_v47  ;;  %v222_v56 = vsel %vm221_vm7, %v407_v46, %v218_v53  ;;  %vm277_vm9 = vweird.f32 %v409_v54 }
 0x1c7   :  { %v227_v57 = vsel %vm224_vm8, %v226_v55, %v222_v56  ;;  %vm278_vm11 = vmor %vm276_vm10, %vm277_vm9 }
 0x1c8   :  { %v228_v58 = vmul.f32 %v227_v57, %v574_v15  ;;  %v229_v59 = vmul.f32 16.0, %v227_v57  ;;  %v273_v60 = vsub.f32 1.0, %v272_v24 }
 0x1ca   :  { %v296_v62 = vmul.f32 5.0, %v229_v59  ;;  %287 = vadd.xlane.f32.xlu2 %v228_v58  ;;  %v274_v63 = vmul.f32 %v409_v54, %v273_v60 }
 0x1cc   :  { %v297_v1 = vmul.f32 1.442695, %v296_v62  ;;  %v275_v2 = vadd.f32 %v409_v54, %v274_v63 }
 0x1ce   :  { %410 = vpow2.f32 %v297_v1  ;;  %v279_v4 = vsel %vm278_vm11, %v409_v54, %v275_v2 }
 0x1cf   :  { %v284_v5 = vsel %vm281_vm12, %v283_v3, %v279_v4 }
 0x1d0   :  { %v285_v6 = vmul.f32 %v284_v5, %v577_v17  ;;  %v286_v7 = vmul.f32 16.0, %v284_v5 }
 0x1d2   :  { %v301_v8 = vmul.f32 %v286_v7, %v229_v59  ;;  %289 = vadd.xlane.f32.xlu0 %v285_v6  ;;  %v292_v9 = vmul.f32 %v285_v6, %v228_v58 }
 0x1d4   :  { %v411_v10 = vpop.eup %410  ;;  %293 = vadd.xlane.f32.xlu1 %v292_v9 }
 0x1d5   :  { %300 = vst.msk [vmem:[%s599_s4] sm:$0xff] %vm299_vm13, %v411_v10 }
 0x23d   :  { %v288_v11 = vpop.xlane.xlu2 %287 }
 0x245   :  { %v290_v12 = vpop.xlane.xlu0 %289 }
 0x246   :  { %v291_v13 = vmul.f32 %v290_v12, %v288_v11 }
 0x247   :  { %v294_v14 = vpop.xlane.xlu1 %293 }
 0x248   :  { %v295_v15 = vsub.f32 %v291_v13, %v294_v14 }
 0x24a   :  { %v302_v16 = vsub.f32 1.0, %v295_v15 }
 0x24c   :  { %412 = vrcp.f32 %v302_v16  ;;  %v314_v21 = vand.u32 2147483648, %v302_v16  ;;  %v312_v23 = vand.u32 2147483647, %v302_v16  ;;  %vm308_vm15 = vweird.f32 %v302_v16 }
 0x24e   :  { %v315_v25 = vor.u32 1.1754944e-38, %v314_v21  ;;  %vm313_vm1 = vcmp.eq.f32.partialorder %v312_v23, 8.507059e+37 }
 0x252   :  { %v413_v17 = vpop.eup %412 }
 0x253   :  { %v304_v18 = vmul.f32 %v413_v17, %v302_v16  ;;  %vm309_vm14 = vweird.f32 %v413_v17 }
 0x254   :  { %vm310_vm0 = vmor %vm308_vm15, %vm309_vm14 }
 0x255   :  { %v305_v19 = vsub.f32 1.0, %v304_v18 }
 0x257   :  { %v306_v22 = vmul.f32 %v413_v17, %v305_v19 }
 0x259   :  { %v307_v20 = vadd.f32 %v413_v17, %v306_v22 }
 0x25b   :  { %v311_v26 = vsel %vm310_vm0, %v413_v17, %v307_v20 }
 0x25c   :  { %v316_v27 = vsel %vm313_vm1, %v315_v25, %v311_v26 }
 0x25d   :  { %v317_v28 = vmul.f32 %v316_v27, %v301_v8 }
 0x25f   :  { %v351_v29 = vmul.f32 5.0, %v317_v28 }
 0x261   :  { %v352_v30 = vmul.f32 1.442695, %v351_v29 }
 0x263   :  { %414 = vpow2.f32 %v352_v30 }
 0x269   :  { %v415_v31 = vpop.eup %414 }
 0x26a   :  { %355 = vst.msk [vmem:[%s599_s4] sm:$0xff] %vm354_vm2, %v415_v31 }
 0x26b   :  { %516 = dma.done.wait [#allocation5], 384  }
 0x26c   :  { %517 = vsyncadd [#allocation5], 4294966912 }
 0x26d   :  { %375 = vsyncpa [#allocation4], 1 }
 0x26e   :  { %376 = vsyncpa [#allocation7], 1 }
 0x26f   :  { %377 = vsyncpa [#allocation5], 1 }

</bundles_post_ra>
